<compile_context>
chip_gen: v5e
topology: v5e:2x2
jax: 0.10.0
libtpu: 0.0.40
codegen_flags: <defaults>
</compile_context>

<pallas_src>
import functools

import jax
import jax.numpy as jnp
from jax.experimental import pallas as pl
from jax.experimental.pallas import tpu as pltpu


def _psf_blur_kernel(g_ref, x_ref, o_ref, pad_ref, *, K, H, W, Ho, s):
    """Separable per-band Gaussian PSF blur with fused row decimation.

    g_ref   : (C*K,) f32 SMEM    -- per-band 1-D Gaussian taps (normalized)
    x_ref   : (1, 1, H, W) VMEM  -- one (batch, band) image plane
    o_ref   : (1, 1, Ho, W) VMEM -- row-decimated blurred plane
    pad_ref : (H+K-1, W+K-1) f32 VMEM scratch -- zero-padded plane (halo)
    """
    half = K // 2
    c = pl.program_id(1)          # band index -> this band's taps in SMEM
    w0 = c * K                    # offset of this band's taps

    # Halo handled entirely in VMEM (no HBM-level jnp.pad pass).  Zero the
    # scratch, then copy the plane into the interior; the border stays zero.
    pad_ref[...] = jnp.zeros_like(pad_ref)
    pad_ref[half:half + H, half:half + W] = x_ref[0, 0]

    # ---- vertical 1-D pass with row decimation fused ------------------------
    # Output row r of the decimated result needs padded rows r*s + i, i<K,
    # i.e. a sublane-strided read starting at i with stride s.
    v = g_ref[w0] * pad_ref[pl.ds(0, Ho, stride=s), :]
    for i in range(1, K):
        v = v + g_ref[w0 + i] * pad_ref[pl.ds(i, Ho, stride=s), :]

    # ---- horizontal 1-D pass (full width; columns decimated by the caller) --
    acc = g_ref[w0] * v[:, 0:W]
    for j in range(1, K):
        acc = acc + g_ref[w0 + j] * v[:, j:j + W]

    o_ref[0, 0] = acc.astype(o_ref.dtype)


def physical_downsampling(image, sat_params, factor, resize=True, ksize=7):
    """JAX/Pallas equivalent of PhysicalDownsampling.forward.

    image      : (B, 4, H, W) float32, bands are RGBI
    sat_params : (4,) float32, per-band PSF sigma (SatParams)
    factor     : float, downsampling factor
    """
    image = image.astype(jnp.float32)
    B, C, H, W = image.shape
    K = int(ksize)
    half = K // 2

    # TODO(synk): int(factor) floors non-integer factors; decimation offset 0
    # and sigma = SatParams*factor are modeling assumptions (reference PD not
    # given), kept identical to the previous version.
    s = max(int(factor), 1)
    s_eff = s if resize else 1
    Ho = -(-H // s_eff)          # rows surviving [::s]  (== ceil(H/s))

    # --- glue: per-band separable 1-D Gaussian taps from SatParams * factor --
    sigmas = sat_params.astype(jnp.float32) * jnp.float32(factor)      # (C,)
    coords = jnp.arange(K, dtype=jnp.float32) - float(half)            # (K,)
    g1d = jnp.exp(-0.5 * (coords[None, :] / sigmas[:, None]) ** 2)     # (C, K)
    g1d = g1d / jnp.sum(g1d, axis=1, keepdims=True)
    g_flat = g1d.reshape(-1).astype(jnp.float32)                       # (C*K,)

    Hp, Wp = H + K - 1, W + K - 1
    kernel = functools.partial(_psf_blur_kernel, K=K, H=H, W=W, Ho=Ho, s=s_eff)

    blurred_rows = pl.pallas_call(
        kernel,
        out_shape=jax.ShapeDtypeStruct((B, C, Ho, W), jnp.float32),
        grid_spec=pltpu.PrefetchScalarGridSpec(
            num_scalar_prefetch=0,
            grid=(B, C),
            in_specs=[
                pl.BlockSpec(memory_space=pltpu.MemorySpace.SMEM),       # taps
                pl.BlockSpec((1, 1, H, W), lambda b, c: (b, c, 0, 0)),   # plane
            ],
            out_specs=pl.BlockSpec((1, 1, Ho, W), lambda b, c: (b, c, 0, 0)),
            scratch_shapes=[pltpu.VMEM((Hp, Wp), jnp.float32)],
        ),
        compiler_params=pltpu.CompilerParams(
            dimension_semantics=("parallel", "parallel"),
        ),
    )(g_flat, image)

    if resize:
        # Column decimation of the already row-decimated result (glue).
        blurred_rows = blurred_rows[:, :, :, ::s]
    return blurred_rows


if __name__ == "__main__":
    key = jax.random.PRNGKey(0)
    B, C, H, W = 2, 4, 16, 16
    image = jax.random.normal(key, (B, C, H, W), dtype=jnp.float32)

    # Deterministic synthetic SatParams: per-band (RGBI) PSF sigmas.
    sat_params = jnp.array([0.30, 0.35, 0.40, 0.45], dtype=jnp.float32)
    factor = 2.0

    out = physical_downsampling(image, sat_params, factor, resize=True)
    out = jax.block_until_ready(out)

    assert out.shape == (B, C, H // 2, W // 2), out.shape
    assert out.dtype == jnp.float32
    print("KERNEL_OK")
</pallas_src>

<mosaic_0001>
module attributes {stable_mosaic.version = 11 : i64} {
  func.func @_psf_blur_kernel(%arg0: i32, %arg1: i32, %arg2: memref<28xf32, #tpu.memory_space<smem>>, %arg3: memref<1x1x16x16xf32, #tpu.memory_space<vmem>>, %arg4: memref<1x1x8x16xf32, #tpu.memory_space<vmem>>, %arg5: memref<22x22xf32, #tpu.memory_space<vmem>>) attributes {dimension_semantics = [#tpu.dimension_semantics<parallel>, #tpu.dimension_semantics<parallel>], iteration_bounds = array<i64: 2, 4>, scalar_prefetch = 0 : i64, scratch_operands = 1 : i64, tpu.core_type = #tpu.core_type<tc>, window_params = [{transform_indices = @transform_0, window_bounds = array<i64: 28>}, {transform_indices = @transform_1, window_bounds = array<i64: 1, 1, 16, 16>}, {transform_indices = @transform_2, window_bounds = array<i64: 1, 1, 8, 16>}]} {
    %c7_i32 = arith.constant 7 : i32
    %0 = arith.muli %arg1, %c7_i32 : i32
    %cst = arith.constant 0.000000e+00 : f32
    %1 = vector.broadcast %cst : f32 to vector<22x22xf32>
    %c0 = arith.constant 0 : index
    %c0_0 = arith.constant 0 : index
    %2 = vector.load %arg5[%c0, %c0_0] : memref<22x22xf32, #tpu.memory_space<vmem>>, vector<22x22xf32>
    tpu.vector_store %arg5[%c0, %c0_0], %1 {strides = array<i32>} : memref<22x22xf32, #tpu.memory_space<vmem>>, vector<22x22xf32>,
    %c0_1 = arith.constant 0 : index
    %c0_2 = arith.constant 0 : index
    %c0_3 = arith.constant 0 : index
    %c0_4 = arith.constant 0 : index
    %3 = vector.load %arg3[%c0_1, %c0_2, %c0_3, %c0_4] : memref<1x1x16x16xf32, #tpu.memory_space<vmem>>, vector<1x1x16x16xf32>
    %4 = vector.shape_cast %3 : vector<1x1x16x16xf32> to vector<16x16xf32>
    %c3 = arith.constant 3 : index
    %c3_5 = arith.constant 3 : index
    %5 = vector.load %arg5[%c3, %c3_5] : memref<22x22xf32, #tpu.memory_space<vmem>>, vector<16x16xf32>
    tpu.vector_store %arg5[%c3, %c3_5], %4 {strides = array<i32>} : memref<22x22xf32, #tpu.memory_space<vmem>>, vector<16x16xf32>,
    %6 = arith.index_cast %0 : i32 to index
    %7 = memref.load %arg2[%6] : memref<28xf32, #tpu.memory_space<smem>>
    %c0_6 = arith.constant 0 : index
    %c0_7 = arith.constant 0 : index
    %8 = tpu.strided_load %arg5[%c0_6, %c0_7] {strides = array<i32: 2, 1>} : memref<22x22xf32, #tpu.memory_space<vmem>>, vector<8x22xf32>
    %9 = vector.broadcast %7 : f32 to vector<8x22xf32>
    %10 = arith.mulf %9, %8 : vector<8x22xf32>
    %c1_i32 = arith.constant 1 : i32
    %11 = arith.addi %0, %c1_i32 : i32
    %12 = arith.index_cast %11 : i32 to index
    %13 = memref.load %arg2[%12] : memref<28xf32, #tpu.memory_space<smem>>
    %c1 = arith.constant 1 : index
    %c0_8 = arith.constant 0 : index
    %14 = tpu.strided_load %arg5[%c1, %c0_8] {strides = array<i32: 2, 1>} : memref<22x22xf32, #tpu.memory_space<vmem>>, vector<8x22xf32>
    %15 = vector.broadcast %13 : f32 to vector<8x22xf32>
    %16 = arith.mulf %15, %14 : vector<8x22xf32>
    %17 = arith.addf %10, %16 : vector<8x22xf32>
    %c2_i32 = arith.constant 2 : i32
    %18 = arith.addi %0, %c2_i32 : i32
    %19 = arith.index_cast %18 : i32 to index
    %20 = memref.load %arg2[%19] : memref<28xf32, #tpu.memory_space<smem>>
    %c2 = arith.constant 2 : index
    %c0_9 = arith.constant 0 : index
    %21 = tpu.strided_load %arg5[%c2, %c0_9] {strides = array<i32: 2, 1>} : memref<22x22xf32, #tpu.memory_space<vmem>>, vector<8x22xf32>
    %22 = vector.broadcast %20 : f32 to vector<8x22xf32>
    %23 = arith.mulf %22, %21 : vector<8x22xf32>
    %24 = arith.addf %17, %23 : vector<8x22xf32>
    %c3_i32 = arith.constant 3 : i32
    %25 = arith.addi %0, %c3_i32 : i32
    %26 = arith.index_cast %25 : i32 to index
    %27 = memref.load %arg2[%26] : memref<28xf32, #tpu.memory_space<smem>>
    %c3_10 = arith.constant 3 : index
    %c0_11 = arith.constant 0 : index
    %28 = tpu.strided_load %arg5[%c3_10, %c0_11] {strides = array<i32: 2, 1>} : memref<22x22xf32, #tpu.memory_space<vmem>>, vector<8x22xf32>
    %29 = vector.broadcast %27 : f32 to vector<8x22xf32>
    %30 = arith.mulf %29, %28 : vector<8x22xf32>
    %31 = arith.addf %24, %30 : vector<8x22xf32>
    %c4_i32 = arith.constant 4 : i32
    %32 = arith.addi %0, %c4_i32 : i32
    %33 = arith.index_cast %32 : i32 to index
    %34 = memref.load %arg2[%33] : memref<28xf32, #tpu.memory_space<smem>>
    %c4 = arith.constant 4 : index
    %c0_12 = arith.constant 0 : index
    %35 = tpu.strided_load %arg5[%c4, %c0_12] {strides = array<i32: 2, 1>} : memref<22x22xf32, #tpu.memory_space<vmem>>, vector<8x22xf32>
    %36 = vector.broadcast %34 : f32 to vector<8x22xf32>
    %37 = arith.mulf %36, %35 : vector<8x22xf32>
    %38 = arith.addf %31, %37 : vector<8x22xf32>
    %c5_i32 = arith.constant 5 : i32
    %39 = arith.addi %0, %c5_i32 : i32
    %40 = arith.index_cast %39 : i32 to index
    %41 = memref.load %arg2[%40] : memref<28xf32, #tpu.memory_space<smem>>
    %c5 = arith.constant 5 : index
    %c0_13 = arith.constant 0 : index
    %42 = tpu.strided_load %arg5[%c5, %c0_13] {strides = array<i32: 2, 1>} : memref<22x22xf32, #tpu.memory_space<vmem>>, vector<8x22xf32>
    %43 = vector.broadcast %41 : f32 to vector<8x22xf32>
    %44 = arith.mulf %43, %42 : vector<8x22xf32>
    %45 = arith.addf %38, %44 : vector<8x22xf32>
    %c6_i32 = arith.constant 6 : i32
    %46 = arith.addi %0, %c6_i32 : i32
    %47 = arith.index_cast %46 : i32 to index
    %48 = memref.load %arg2[%47] : memref<28xf32, #tpu.memory_space<smem>>
    %c6 = arith.constant 6 : index
    %c0_14 = arith.constant 0 : index
    %49 = tpu.strided_load %arg5[%c6, %c0_14] {strides = array<i32: 2, 1>} : memref<22x22xf32, #tpu.memory_space<vmem>>, vector<8x22xf32>
    %50 = vector.broadcast %48 : f32 to vector<8x22xf32>
    %51 = arith.mulf %50, %49 : vector<8x22xf32>
    %52 = arith.addf %45, %51 : vector<8x22xf32>
    %53 = arith.index_cast %0 : i32 to index
    %54 = memref.load %arg2[%53] : memref<28xf32, #tpu.memory_space<smem>>
    %55 = vector.extract_strided_slice %52 {offsets = [0, 0], sizes = [8, 16], strides = [1, 1]} : vector<8x22xf32> to vector<8x16xf32>
    %56 = vector.broadcast %54 : f32 to vector<8x16xf32>
    %57 = arith.mulf %56, %55 : vector<8x16xf32>
    %c1_i32_15 = arith.constant 1 : i32
    %58 = arith.addi %0, %c1_i32_15 : i32
    %59 = arith.index_cast %58 : i32 to index
    %60 = memref.load %arg2[%59] : memref<28xf32, #tpu.memory_space<smem>>
    %61 = vector.extract_strided_slice %52 {offsets = [0, 1], sizes = [8, 16], strides = [1, 1]} : vector<8x22xf32> to vector<8x16xf32>
    %62 = vector.broadcast %60 : f32 to vector<8x16xf32>
    %63 = arith.mulf %62, %61 : vector<8x16xf32>
    %64 = arith.addf %57, %63 : vector<8x16xf32>
    %c2_i32_16 = arith.constant 2 : i32
    %65 = arith.addi %0, %c2_i32_16 : i32
    %66 = arith.index_cast %65 : i32 to index
    %67 = memref.load %arg2[%66] : memref<28xf32, #tpu.memory_space<smem>>
    %68 = vector.extract_strided_slice %52 {offsets = [0, 2], sizes = [8, 16], strides = [1, 1]} : vector<8x22xf32> to vector<8x16xf32>
    %69 = vector.broadcast %67 : f32 to vector<8x16xf32>
    %70 = arith.mulf %69, %68 : vector<8x16xf32>
    %71 = arith.addf %64, %70 : vector<8x16xf32>
    %c3_i32_17 = arith.constant 3 : i32
    %72 = arith.addi %0, %c3_i32_17 : i32
    %73 = arith.index_cast %72 : i32 to index
    %74 = memref.load %arg2[%73] : memref<28xf32, #tpu.memory_space<smem>>
    %75 = vector.extract_strided_slice %52 {offsets = [0, 3], sizes = [8, 16], strides = [1, 1]} : vector<8x22xf32> to vector<8x16xf32>
    %76 = vector.broadcast %74 : f32 to vector<8x16xf32>
    %77 = arith.mulf %76, %75 : vector<8x16xf32>
    %78 = arith.addf %71, %77 : vector<8x16xf32>
    %c4_i32_18 = arith.constant 4 : i32
    %79 = arith.addi %0, %c4_i32_18 : i32
    %80 = arith.index_cast %79 : i32 to index
    %81 = memref.load %arg2[%80] : memref<28xf32, #tpu.memory_space<smem>>
    %82 = vector.extract_strided_slice %52 {offsets = [0, 4], sizes = [8, 16], strides = [1, 1]} : vector<8x22xf32> to vector<8x16xf32>
    %83 = vector.broadcast %81 : f32 to vector<8x16xf32>
    %84 = arith.mulf %83, %82 : vector<8x16xf32>
    %85 = arith.addf %78, %84 : vector<8x16xf32>
    %c5_i32_19 = arith.constant 5 : i32
    %86 = arith.addi %0, %c5_i32_19 : i32
    %87 = arith.index_cast %86 : i32 to index
    %88 = memref.load %arg2[%87] : memref<28xf32, #tpu.memory_space<smem>>
    %89 = vector.extract_strided_slice %52 {offsets = [0, 5], sizes = [8, 16], strides = [1, 1]} : vector<8x22xf32> to vector<8x16xf32>
    %90 = vector.broadcast %88 : f32 to vector<8x16xf32>
    %91 = arith.mulf %90, %89 : vector<8x16xf32>
    %92 = arith.addf %85, %91 : vector<8x16xf32>
    %c6_i32_20 = arith.constant 6 : i32
    %93 = arith.addi %0, %c6_i32_20 : i32
    %94 = arith.index_cast %93 : i32 to index
    %95 = memref.load %arg2[%94] : memref<28xf32, #tpu.memory_space<smem>>
    %96 = vector.extract_strided_slice %52 {offsets = [0, 6], sizes = [8, 16], strides = [1, 1]} : vector<8x22xf32> to vector<8x16xf32>
    %97 = vector.broadcast %95 : f32 to vector<8x16xf32>
    %98 = arith.mulf %97, %96 : vector<8x16xf32>
    %99 = arith.addf %92, %98 : vector<8x16xf32>
    %c0_21 = arith.constant 0 : index
    %c0_22 = arith.constant 0 : index
    %c0_23 = arith.constant 0 : index
    %c0_24 = arith.constant 0 : index
    %100 = vector.load %arg4[%c0_21, %c0_22, %c0_23, %c0_24] : memref<1x1x8x16xf32, #tpu.memory_space<vmem>>, vector<1x1x8x16xf32>
    %101 = vector.shape_cast %100 : vector<1x1x8x16xf32> to vector<8x16xf32>
    %102 = vector.shape_cast %99 : vector<8x16xf32> to vector<1x1x8x16xf32>
    tpu.vector_store %arg4[%c0_21, %c0_22, %c0_23, %c0_24], %102 {strides = array<i32>} : memref<1x1x8x16xf32, #tpu.memory_space<vmem>>, vector<1x1x8x16xf32>,
    return
  }
  func.func @transform_0(%arg0: i32, %arg1: i32) -> i32 {
    %c0_i32 = arith.constant 0 : i32
    %c0_i32_0 = arith.constant 0 : i32
    return %c0_i32 : i32
  }
  func.func @transform_1(%arg0: i32, %arg1: i32) -> (i32, i32, i32, i32) {
    %c0_i32 = arith.constant 0 : i32
    %c0_i32_0 = arith.constant 0 : i32
    %c0_i32_1 = arith.constant 0 : i32
    return %arg0, %arg1, %c0_i32, %c0_i32_0 : i32, i32, i32, i32
  }
  func.func @transform_2(%arg0: i32, %arg1: i32) -> (i32, i32, i32, i32) {
    %c0_i32 = arith.constant 0 : i32
    %c0_i32_0 = arith.constant 0 : i32
    %c0_i32_1 = arith.constant 0 : i32
    return %arg0, %arg1, %c0_i32, %c0_i32_0 : i32, i32, i32, i32
  }
}

</mosaic_0001>

<bundles_post_ra>
// kernel: tpu_custom_call.1
= control target key start
LH: loop header
LB: loop body
LE: loop exit
PB: predicated region body
PF: predicated region fallthrough
CT: control target
= control target key end

     0   :  { %s895_s0 = inlined_call_operand.hbm [shape: f32[28], index: 0, kind: input, shape index: {}]   ;;  %s896_s1 = inlined_call_operand.hbm [shape: f32[2,4,16,16], index: 1, kind: input, shape index: {}]   ;;  %s897_s2 = inlined_call_operand.hbm [shape: f32[2,4,8,16], index: 2, kind: output, shape index: {}]  }
   0x1   :  { %907 = sst [smem:[#allocation18_spill]] %s895_s0 }
   0x2   :  { %908 = sst [smem:[#allocation19_spill]] %s897_s2 }
   0x3   :  { %7 = vsyncpa [#allocation6], 0 }
   0x4   :  { %8 = vsyncpa [#allocation4], 0 }
   0x5   :  { %10 = vsyncpa [#allocation4 + $0x1], 0 }
   0x6   :  { %11 = vsyncpa [#allocation5], 0 }
   0x7   :  { %13 = vsyncpa [#allocation5 + $0x1], 0  ;;  %s708_s9 = smov 0   ;;  %s710_s10 = smov 0  }
   0x8   :  { %s712_s11 = smov 0   ;;  %s714_s12 = smov 0  }
   0x9   :  { %s716_s13 = smov 0   ;;  %s718_s14 = smov 0  }
   0xa   :  { %s720_s15 = smov 0   ;;  %s722_s16 = smov 0  }
   0xb LB: > { %909 = sst [smem:[#allocation12_spill]] %s652_s9  ;;  %s416_s17 = sadd.s32 4294967295, %s680_s16   ;;  %s680_s16 = sphi %s722_s16, %s19_s16   ;;  %s676_s15 = sphi %s720_s15, %s935_s15   ;;  %s672_s14 = sphi %s718_s14, %s930_s14   ;;  %s668_s13 = sphi %s716_s13, %s934_s13   ;;  %s664_s12 = sphi %s714_s12, %s929_s12   ;;  %s660_s11 = sphi %s712_s11, %s933_s11   ;;  %s656_s10 = sphi %s710_s10, %s932_s10   ;;  %s652_s9 = sphi %s708_s9, %s931_s9  }
   0xc   : > { %910 = sst [smem:[#allocation13_spill]] %s672_s14  ;;  %s417_s18 = sadd.s32 4294967294, %s680_s16  }
   0xd   : > { %911 = sst [smem:[#allocation14_spill]] %s680_s16  ;;  %p68_p0 = scmp.ne.s32.totalorder %s660_s11, %s656_s10 }
   0xe   : > { %p69_p1 = scmp.eq.s32.totalorder %s680_s16, 0  ;;  %p74_p2 = scmp.ne.s32.totalorder %s656_s10, %s652_s9 }
   0xf   : > { %p756_p3 = scmp.eq.s32.totalorder %s416_s17, 0  ;;  %p100_p4 = scmp.eq.s32.totalorder %s416_s17, 7 }
  0x10   : > { %p70_p5 = por %p69_p1, %p68_p0  ;;  %p106_p6 = scmp.eq.s32.totalorder %s417_s18, 7 }
  0x11   : > { %p762_p7 = por %p756_p3, %p74_p2  ;;  %p766_p8 = por %p100_p4, %p68_p0 }
  0x12   : > { %p770_p9 = por %p106_p6, %p74_p2  ;;  %p418_p10 = scmp.ge.s32.totalorder %s680_s16, 1 }
  0x13   : > { %s914_s22 = scalar_select %p766_p8, 1, 0 }
  0x14   : > { %s916_s23 = scalar_select %p770_p9, 1, 0 }
  0x15   : > { %915 = sst [smem:[#allocation15_spill]] %s914_s22  ;;  %p113_p11 = scmp.lt.s32.totalorder %s680_s16, 9 }
  0x16   : > { %917 = sst [smem:[#allocation16_spill]] %s916_s23  ;;  %p455_p13 = scmp.lt.s32.totalorder %s680_s16, 8 }
  0x17   : > { %s918_s0 = sld [smem:[#allocation18_spill]]  ;;  %p779_p12 = pnand %p418_p10, %p113_p11 }
  0x18   : > { %p786_p1 = pnand %p455_p13, %p70_p5  ;;  %s28_s29 = sadd.s32 1, %s672_s14 }
  0x19   : > { %p442_p0 = pneg %p779_p12  ;;  %s682_s30 = smov [#allocation3]  }
  0x1a   : > { %p29_p4 = scmp.ge.s32.totalorder %s28_s29, 4  ;;  %s31_s3 = sadd.s32 1, %s676_s15 }
  0x1b   : > { %p443_p2 = pnand %p442_p0, %p756_p3  ;;  %s136_s4 = sand.u32 1, %s660_s11  }
  0x1c   : > { %s422_s5 = sshll.u32 %s672_s14, 1  ;;  %s937_s29 = smov (%p29_p4, %s28_s29), 0 }
  0x1d   : > { %s125_s26 = sshll.u32 %s918_s0, 4  ;;  %921 = sst [smem:[#allocation17_spill]] %s937_s29  ;;  %s126_s26 = int_to_ptr.hbm [resolvable:$true] %s125_s26 }
  0x1e   : > { %445 = dma.hbm_to_smem (!%p443_p2), %s126_s26, 16, %s682_s30, [#allocation6]  }
  0x1f   : > { %s939_s3 = smov (!%p29_p4, %s31_s3), %s676_s15  ;;  %s57_s6 = ssub.s32 %s672_s14, %s937_s29 }
  0x20   : > { %p33_p5 = scmp.ge.s32.totalorder %s939_s3, 2  ;;  %s421_s7 = sshll.u32 %s136_s4, 4 }
  0x21   : > { %s423_s8 = sshll.u32 %s676_s15, 3  ;;  %s140_s18 = scalar_lea.vmem [#allocation7], %s421_s7 }
  0x22   : > { %s941_s3 = smov (%p33_p5, %s939_s3), 0  ;;  %s145_s17 = sadd.s32 %s423_s8, %s422_s5 }
  0x23   : > { %s150_s24 = sshll.u32 %s140_s18, 4  ;;  %s56_s25 = ssub.s32 %s676_s15, %s941_s3  ;;  %s151_s24 = int_to_ptr.vmem [resolvable:$true] %s150_s24 }
  0x24   : > { %s424_s26 = sshll.u32 %s145_s17, 3  ;;  %s58_s30 = sor.u32 %s57_s6, %s56_s25 }
  0x25   : > { %s147_s23 = scalar_lea.hbm %s896_s1, %s424_s26  ;;  %p59_p6 = scmp.eq.s32.totalorder %s58_s30, 0 }
  0x26   : > { %s148_s29 = sshll.u32 %s147_s23, 4  ;;  %s922_s14 = sadd.s32 1, %s660_s11  ;;  %s149_s29 = int_to_ptr.hbm [resolvable:$true] %s148_s29 }
  0x27   : > { %s812_s9 = scalar_select %p59_p6, %s660_s11, %s922_s14  }
  0x28   : > { %s137_s16 = scalar_lea.sflag [#allocation4], %s136_s4  ;;  %s683_s22 = smov 128  }
  0x29   : > { %s684_s2 = smov 8   ;;  %162 = sbr.rel (%p779_p12) target bundleno = 338 (0x152), region = 28 }
  0x2a   : > { %449 = dma.hbm_to_vmem [thread:$0]  (!%p786_p1), %s149_s29, 256, %s151_s24, %s137_s16, %s683_s22, %s683_s22, %s684_s2  }
  0x2e   : > { %639 = dma.done.wait (%p756_p3), [#allocation6], 16  }
  0x2f   : > { %641 = vsyncadd (%p756_p3), [#allocation6], 4294967280  ;;  %s823_s0 = sand.u32 1, %s656_s10  }
  0x30   : > { %s427_s14 = sshll.u32 %s823_s0, 4  ;;  %s170_s19 = scalar_lea.sflag [#allocation4], %s823_s0 }
  0x31   : > { %s173_s23 = scalar_lea.vmem [#allocation7], %s427_s14 }
  0x32   : > { %643 = dma.done.wait (%p762_p7), %s170_s19, 256  }
  0x33   : > { %645 = vsyncadd (%p762_p7), %s170_s19, 4294967040 }
  0x34   : > { %179 = sfence }
  0x35   : > { %v202_v0 = vld [vmem:[%s173_s23] sm:$0xff]  ;;  %s685_s2 = smov 3   ;;  %v203_v1 = vld [vmem:[%s173_s23 + $0x8] sm:$0xff]  ;;  %vm197_vm0 = vcmask 179200   ;;  %v686_v2 = vmov 0.0   ;;  %vm200_vm1 = vcmask 177152  }
  0x36   : > { %206 = vrot.lane.b32.xlu0 %v202_v0, %s685_s2  ;;  %198 = vst.msk [vmem:[#allocation2] sm:$0xff] %vm197_vm0, %v686_v2  ;;  %vm212_vm2 = vcmask 154648   ;;  %s196_s16 = smul.u32 7, %s664_s12  ;;  %s687_s24 = smov 123   ;;  %vm298_vm3 = vcmask 130048  }
  0x37   : > { %199 = vst.msk [vmem:[#allocation2 + $0x8] sm:$0xff] %vm197_vm0, %v686_v2  ;;  %s688_s25 = smov 125   ;;  %s689_s26 = smov 127  }
  0x38   : > { %201 = vst.msk [vmem:[#allocation2 + $0x10] sm:$0x3f] %vm200_vm1, %v686_v2  ;;  %s219_s20 = sadd.s32 1, %s196_s16  ;;  %s832_s21 = sld [smem:[#allocation3 + %s196_s16]] }
  0x39   : > { %s226_s22 = sadd.s32 2, %s196_s16  ;;  %s834_s27 = sld [smem:[#allocation3 + %s219_s20]] }
  0x3a   : > { %s233_s28 = sadd.s32 3, %s196_s16  ;;  %s836_s29 = sld [smem:[#allocation3 + %s226_s22]] }
  0x3b   : > { %s240_s4 = sadd.s32 4, %s196_s16  ;;  %s838_s5 = sld [smem:[#allocation3 + %s233_s28]] }
  0x3c   : > { %s247_s6 = sadd.s32 5, %s196_s16  ;;  %s840_s7 = sld [smem:[#allocation3 + %s240_s4]] }
  0x3d   : > { %s254_s8 = sadd.s32 6, %s196_s16  ;;  %s248_s17 = sld [smem:[#allocation3 + %s247_s6]] }
  0x3e   : > { %208 = vrot.lane.b32.xlu0 %v203_v1, %s685_s2  ;;  %v217_v5 = vstv %s832_s21  ;;  %s844_s18 = sld [smem:[#allocation3 + %s254_s8]]  ;;  %s690_s30 = smov 124  }
  0x3f   : > { %v223_v6 = vstv %s834_s27  ;;  %s691_s14 = smov 126   ;;  %s692_s19 = smov 122  }
  0x40   : > { %v230_v10 = vstv %s836_s29  ;;  %s430_s23 = sshll.u32 %s668_s13, 2  ;;  %s428_s16 = sshll.u32 %s823_s0, 3 }
  0x41   : > { %v237_v14 = vstv %s838_s5  ;;  %s311_s2 = sadd.s32 %s664_s12, %s430_s23  ;;  %s923_s27 = sld [smem:[#allocation19_spill]] }
  0x42   : > { %v244_v18 = vstv %s840_s7  ;;  %s431_s20 = sshll.u32 %s311_s2, 3  ;;  %s195_s4 = scalar_lea.vmem [#allocation8], %s428_s16 }
  0x43   : > { %v251_v22 = vstv %s248_s17  ;;  %s315_s5 = sshll.u32 %s195_s4, 4  ;;  %s301_s12 = scalar_lea.sflag [#allocation5], %s823_s0  ;;  %s316_s5 = int_to_ptr.vmem [resolvable:$true] %s315_s5 }
  0x44   : > { %v258_v26 = vstv %s844_s18 }
  0x47   : > { %s313_s28 = scalar_lea.hbm %s923_s27, %s431_s20  ;;  %s598_s18 = scalar_lea.hbm %s923_s27, 64 }
  0x48   : > { %s317_s6 = sshll.u32 %s313_s28, 4  ;;  %s318_s6 = int_to_ptr.hbm [resolvable:$true] %s317_s6 }
  0x49   : > { %s592_s13 = sshra.s32 %s318_s6, 4  ;;  %s593_s13 = int_to_ptr.hbm [resolvable:$true] %s592_s13 }
  0x4a   : > { %s594_s7 = scalar_lea.hbm %s593_s13, 8  ;;  %p599_p11 = scmp.lt.s32.totalorder %s593_s13, %s923_s27 }
  0x4b   : > { %p595_p3 = scmp.ne.s32.totalorder %s593_s13, %s594_s7  ;;  %p600_p12 = scmp.lt.s32.totalorder %s598_s18, %s594_s7 }
  0x4d   : > { %p596_p7 = pnand %p595_p3, %p766_p8  ;;  %p601_p13 = por %p600_p12, %p599_p11 }
  0x4f   : > { %p597_p10 = pneg %p596_p7 }
  0x51   : > { %p602_p0 = pnand %p601_p13, %p597_p10 }
  0xa8   : > { %v207_v3 = vpop.permute.xlu0 %206 }
  0xa9   : > { %213 = vst.msk [vmem:[#allocation2 + $0x3] sm:$0xff] %vm212_vm2, %v207_v3 }
  0xb0   : > { %v209_v4 = vpop.permute.xlu0 %208 }
  0xb1   : > { %214 = vst.msk [vmem:[#allocation2 + $0xb] sm:$0xff] %vm212_vm2, %v209_v4 }
  0xb8   : > { %v216_v7 = vld [vmem:[#allocation2] ss:$2 sm:$0xff]  ;;  %v222_v8 = vld [vmem:[#allocation2 + $0x1] ss:$2 sm:$0xff] }
  0xb9   : > { %v229_v9 = vld [vmem:[#allocation2 + $0x2] ss:$2 sm:$0xff]  ;;  %v218_v11 = vmul.f32 %v217_v5, %v216_v7  ;;  %v224_v12 = vmul.f32 %v223_v6, %v222_v8  ;;  %v236_v13 = vld [vmem:[#allocation2 + $0x3] ss:$2 sm:$0xff] }
  0xba   : > { %v231_v16 = vmul.f32 %v230_v10, %v229_v9  ;;  %v243_v17 = vld [vmem:[#allocation2 + $0x4] ss:$2 sm:$0xff]  ;;  %v238_v20 = vmul.f32 %v237_v14, %v236_v13  ;;  %v250_v21 = vld [vmem:[#allocation2 + $0x5] ss:$2 sm:$0xff] }
  0xbb   : > { %v225_v15 = vadd.f32 %v224_v12, %v218_v11  ;;  %v245_v24 = vmul.f32 %v244_v18, %v243_v17  ;;  %v257_v25 = vld [vmem:[#allocation2 + $0x6] ss:$2 sm:$0xff]  ;;  %v252_v28 = vmul.f32 %v251_v22, %v250_v21 }
  0xbc   : > { %v259_v30 = vmul.f32 %v258_v26, %v257_v25 }
  0xbd   : > { %v232_v19 = vadd.f32 %v231_v16, %v225_v15 }
  0xbf   : > { %v239_v23 = vadd.f32 %v238_v20, %v232_v19 }
  0xc1   : > { %v246_v27 = vadd.f32 %v245_v24, %v239_v23 }
  0xc3   : > { %v253_v29 = vadd.f32 %v252_v28, %v246_v27 }
  0xc5   : > { %v260_v31 = vadd.f32 %v259_v30, %v253_v29 }
  0xc7   : > { %v286_v32 = vmul.f32 %v260_v31, %v251_v22  ;;  %v274_v33 = vmul.f32 %v260_v31, %v237_v14  ;;  %v262_v34 = vmul.f32 %v260_v31, %v223_v6  ;;  %v261_v35 = vmul.f32 %v260_v31, %v217_v5 }
  0xc8   : > { %v280_v36 = vmul.f32 %v260_v31, %v244_v18  ;;  %v268_v37 = vmul.f32 %v260_v31, %v230_v10  ;;  %v292_v38 = vmul.f32 %v260_v31, %v258_v26 }
  0xc9   : > { %288 = vrot.lane.b32.xlu0 %v286_v32, %s687_s24  ;;  %276 = vrot.lane.b32.xlu2 %v274_v33, %s688_s25 }
  0xca   : > { %264 = vrot.lane.b32.xlu1 %v262_v34, %s689_s26 }
  0xd1   : > { %282 = vrot.lane.b32.xlu2 %v280_v36, %s690_s30 }
  0xd2   : > { %270 = vrot.lane.b32.xlu1 %v268_v37, %s691_s14 }
  0xda   : > { %294 = vrot.lane.b32.xlu1 %v292_v38, %s692_s19 }
 0x123   : > { %v277_v40 = vpop.permute.xlu2 %276 }
 0x12b   : > { %v283_v45 = vpop.permute.xlu2 %282 }
 0x13b   : > { %v289_v47 = vpop.permute.xlu0 %288 }
 0x13c   : > { %v265_v39 = vpop.permute.xlu1 %264 }
 0x13d   : > { %v267_v41 = vadd.f32 %v265_v39, %v261_v35 }
 0x144   : > { %v271_v42 = vpop.permute.xlu1 %270 }
 0x145   : > { %v273_v43 = vadd.f32 %v271_v42, %v267_v41 }
 0x147   : > { %v279_v44 = vadd.f32 %v277_v40, %v273_v43 }
 0x149   : > { %v285_v46 = vadd.f32 %v283_v45, %v279_v44 }
 0x14b   : > { %v291_v48 = vadd.f32 %v289_v47, %v285_v46 }
 0x14c   : > { %v295_v49 = vpop.permute.xlu1 %294 }
 0x14d   : > { %v297_v50 = vadd.f32 %v295_v49, %v291_v48 }
 0x14f   : > { %299 = vst.msk [vmem:[%s195_s4] sm:$0xff] %vm298_vm3, %v297_v50 }
 0x150   : > { %605 = shalt.err (!%p602_p0)
}
 0x151   : > { %440 = dma.vmem_to_hbm [thread:$0]  (%p766_p8), %s316_s5, 128, %s318_s6, %s301_s12  }
 0x152 PF: > { %s925_s0 = sld [smem:[#allocation14_spill]] }
 0x153   : > { %s926_s26 = sld [smem:[#allocation12_spill]] }
 0x158   : > { %p457_p1 = scmp.ge.s32.totalorder %s925_s0, 2 }
 0x159   : > { %s329_s14 = sand.u32 1, %s926_s26  }
 0x15a   : > { %p451_p2 = pnand %p457_p1, %p770_p9  ;;  %s330_s19 = scalar_lea.sflag [#allocation5], %s329_s14 }
 0x15c   : > { %p452_p4 = pneg %p451_p2 }
 0x15e   : > { %647 = dma.done.wait (%p452_p4), %s330_s19, 128  }
 0x15f   : > { %649 = vsyncadd (%p452_p4), %s330_s19, 4294967168  ;;  %s19_s16 = sadd.s32 1, %s925_s0   ;;  %s928_s23 = smov %s812_s9 }
 0x160   : > { %p16_p5 = scmp.ge.s32.totalorder %s19_s16, 10   ;;  %s929_s12 = sld [smem:[#allocation13_spill]] }
 0x161   : > { %s930_s14 = sld [smem:[#allocation17_spill]]  ;;  %s931_s9 = smov %s656_s10 }
 0x162   : > { %s932_s10 = smov %s660_s11  ;;  %s933_s11 = smov %s928_s23 }
 0x163   : > { %s934_s13 = smov %s676_s15  ;;  %s935_s15 = smov %s941_s3 }
 0x164   :  { %18 = sbr.rel (!%p16_p5) target bundleno = 11 (0xb), region = 84 }
 0x169   :  { %336 = vsyncpa [#allocation4], 1 }
 0x16a   :  { %338 = vsyncpa [#allocation4 + $0x1], 1 }
 0x16b   :  { %339 = vsyncpa [#allocation5], 1 }
 0x16c   :  { %341 = vsyncpa [#allocation5 + $0x1], 1 }
 0x16d   :  { %342 = vsyncpa [#allocation6], 1 }
 0x16e   :  { %344 = vsyncpa [#allocation6 + $0x1], 1 }

</bundles_post_ra>
